<compile_context>
chip_gen: v6e
topology: v6e:2x2x1
jax: 0.10.0
libtpu: 0.0.40
codegen_flags: <defaults>
</compile_context>

<pallas_src>
import functools

import jax
import jax.numpy as jnp
from jax.experimental import pallas as pl
from jax.experimental.pallas import tpu as pltpu

REPARAM_NOISE = 0.001  # module-level `reparam_noise` used in torch.clamp


def actor_kernel(x_ref, w1_ref, b1_ref, w2_ref, b2_ref, wh_ref, bh_ref,
                 out_ref, *, action_dim):
    """One batch tile: fc1+relu, fc2+relu, fused (mu|sigma) head, sigmoid on sigma lanes."""
    cdt = w1_ref.dtype  # compute dtype for MXU inputs (bf16), accumulation stays f32

    # fc1 + relu  (bias add / relu in f32)
    h1 = jnp.dot(x_ref[...].astype(cdt), w1_ref[...],
                 preferred_element_type=jnp.float32)
    h1 = jnp.maximum(h1 + b1_ref[...], 0.0)

    # fc2 + relu
    h2 = jnp.dot(h1.astype(cdt), w2_ref[...],
                 preferred_element_type=jnp.float32)
    h2 = jnp.maximum(h2 + b2_ref[...], 0.0)

    # fused heads: lanes [0, A) = mu, lanes [A, 2A) = sigma logits, rest = zero padding
    heads = jnp.dot(h2.astype(cdt), wh_ref[...],
                    preferred_element_type=jnp.float32) + bh_ref[...]

    lane = jax.lax.broadcasted_iota(jnp.int32, heads.shape, 1)
    is_sigma = (lane >= action_dim) & (lane < 2 * action_dim)
    out = jnp.where(is_sigma, jax.nn.sigmoid(heads), heads)

    out_ref[...] = out.astype(out_ref.dtype)


def _pick_batch_tile(B):
    """Tile in the 256-1024 range when B is big (amortizes ~0.35us/step), keep >=2 grid
    steps when possible so the 'parallel' batch axis can shard over v7x's 2 TensorCores."""
    if B <= 256:
        return B
    for cand in (1024, 512, 256):
        if B % cand == 0 and B // cand >= 2:
            return cand
    for cand in range(min(B, 1024), 7, -8):
        if B % cand == 0:
            return cand
    return B


def actor_forward(state, params, *, batch_tile=None, use_bf16=True):
    """ActorNetwork forward. state: [B, state_dim] float32. Returns (mu, sigma_clamp, sigma)."""
    w1, b1, w2, b2, wmu, bmu, ws, bs = params
    B, state_dim = state.shape
    fc1_dims = w1.shape[1]
    fc2_dims = w2.shape[1]
    action_dim = wmu.shape[1]

    # --- fuse + lane-pad the two heads (done once in the wrapper, outside the kernel) ---
    head_pad = max(128, ((2 * action_dim + 127) // 128) * 128)
    wh = jnp.concatenate([wmu, ws], axis=1)
    bh = jnp.concatenate([bmu, bs], axis=1)
    wh = jnp.pad(wh, ((0, 0), (0, head_pad - 2 * action_dim)))
    bh = jnp.pad(bh, ((0, 0), (0, head_pad - 2 * action_dim)))

    # bf16 weights for the MXU; biases stay f32 (added to f32 accumulators).
    wdt = jnp.bfloat16 if use_bf16 else jnp.float32
    w1c, w2c, whc = w1.astype(wdt), w2.astype(wdt), wh.astype(wdt)
    b1c, b2c, bhc = b1.astype(jnp.float32), b2.astype(jnp.float32), bh.astype(jnp.float32)

    tb = batch_tile if batch_tile is not None else _pick_batch_tile(B)
    assert B % tb == 0, f"batch {B} must be divisible by batch_tile {tb}"
    grid = (B // tb,)

    def full_spec(shape):
        # Weights / biases: constant-index full-array blocks (resident across the grid).
        return pl.BlockSpec(shape, lambda i: (0, 0))

    in_specs = [
        pl.BlockSpec((tb, state_dim), lambda i: (i, 0)),   # state tile
        full_spec(w1c.shape), full_spec(b1c.shape),
        full_spec(w2c.shape), full_spec(b2c.shape),
        full_spec(whc.shape), full_spec(bhc.shape),
    ]
    out_spec = pl.BlockSpec((tb, head_pad), lambda i: (i, 0))
    out_shape = jax.ShapeDtypeStruct((B, head_pad), jnp.float32)

    itemsize = 2 if use_bf16 else 4
    cost = pl.CostEstimate(
        flops=2 * B * (state_dim * fc1_dims + fc1_dims * fc2_dims + fc2_dims * head_pad),
        transcendentals=B * action_dim,
        bytes_accessed=(w1c.size + w2c.size + whc.size) * itemsize
        + (b1c.size + b2c.size + bhc.size) * 4
        + B * state_dim * 4 + B * head_pad * 4,
    )

    heads = pl.pallas_call(
        functools.partial(actor_kernel, action_dim=action_dim),
        out_shape=out_shape,
        grid_spec=pltpu.PrefetchScalarGridSpec(
            num_scalar_prefetch=0,
            grid=grid,
            in_specs=in_specs,
            out_specs=out_spec,
        ),
        compiler_params=pltpu.CompilerParams(
            dimension_semantics=("parallel",)),
        cost_estimate=cost,
    )(state, w1c, b1c, w2c, b2c, whc, bhc)

    # Slice the lane-dense kernel output; the clamp is fused by XLA in the wrapper.
    mu = heads[:, :action_dim]
    sigma = heads[:, action_dim:2 * action_dim]
    sigma_clamp = jnp.maximum(sigma, REPARAM_NOISE)
    return mu, sigma_clamp, sigma


def init_params(key, state_dim, action_dim, fc1_dims=128, fc2_dims=128):
    """Deterministic synthetic params (PyTorch-Linear-like uniform init), f32,
    weights stored as [in_features, out_features]."""
    ks = jax.random.split(key, 8)

    def linear(kw, kb, fan_in, fan_out):
        bound = 1.0 / jnp.sqrt(fan_in)
        w = jax.random.uniform(kw, (fan_in, fan_out), jnp.float32, -bound, bound)
        b = jax.random.uniform(kb, (1, fan_out), jnp.float32, -bound, bound)
        return w, b

    w1, b1 = linear(ks[0], ks[1], state_dim, fc1_dims)
    w2, b2 = linear(ks[2], ks[3], fc1_dims, fc2_dims)
    wmu, bmu = linear(ks[4], ks[5], fc2_dims, action_dim)
    ws, bs = linear(ks[6], ks[7], fc2_dims, action_dim)
    return (w1, b1, w2, b2, wmu, bmu, ws, bs)


def reference_forward(state, params, use_bf16=True):
    """Pure-JAX reference mirroring the kernel's numerics (bf16 MXU inputs, f32 accum)."""
    w1, b1, w2, b2, wmu, bmu, ws, bs = params
    dt = jnp.bfloat16 if use_bf16 else jnp.float32

    def mm(x, w):
        return jnp.dot(x.astype(dt), w.astype(dt), preferred_element_type=jnp.float32)

    h1 = jnp.maximum(mm(state, w1) + b1, 0.0)
    h2 = jnp.maximum(mm(h1, w2) + b2, 0.0)
    mu = mm(h2, wmu) + bmu
    sig = jax.nn.sigmoid(mm(h2, ws) + bs)
    return mu, jnp.maximum(sig, REPARAM_NOISE), sig


# TODO(synk): sample_normal (Normal rsample + tanh squash), the Adam optimizer and
# checkpoint I/O are host/training-side logic and are intentionally not part of the kernel.

if __name__ == "__main__":
    key = jax.random.PRNGKey(0)
    k_state, k_params = jax.random.split(key)

    batch, state_dim, action_dim = 8, 16, 8
    fc1_dims = fc2_dims = 128

    state = jax.random.normal(k_state, (batch, state_dim), dtype=jnp.float32)
    params = init_params(k_params, state_dim, action_dim, fc1_dims, fc2_dims)

    mu, sigma_clamp, sigma = actor_forward(state, params)
    jax.block_until_ready((mu, sigma_clamp, sigma))

    # correctness check against a pure-JAX reference with matching numerics
    mu_r, sigc_r, sig_r = reference_forward(state, params)
    assert mu.shape == (batch, action_dim)
    assert jnp.allclose(mu, mu_r, atol=2e-3, rtol=2e-3), "mu mismatch"
    assert jnp.allclose(sigma_clamp, sigc_r, atol=2e-3, rtol=2e-3), "sigma_clamp mismatch"
    assert jnp.allclose(sigma, sig_r, atol=2e-3, rtol=2e-3), "sigma mismatch"
    assert bool(jnp.all(sigma_clamp >= REPARAM_NOISE)), "clamp violated"

    print("KERNEL_OK")
</pallas_src>

<mosaic_0001>
module attributes {stable_mosaic.version = 11 : i64} {
  func.func @actor_kernel(%arg0: i32, %arg1: memref<8x16xf32, #tpu.memory_space<vmem>>, %arg2: memref<16x128xbf16, #tpu.memory_space<vmem>>, %arg3: memref<1x128xf32, #tpu.memory_space<vmem>>, %arg4: memref<128x128xbf16, #tpu.memory_space<vmem>>, %arg5: memref<1x128xf32, #tpu.memory_space<vmem>>, %arg6: memref<128x128xbf16, #tpu.memory_space<vmem>>, %arg7: memref<1x128xf32, #tpu.memory_space<vmem>>, %arg8: memref<8x128xf32, #tpu.memory_space<vmem>>) attributes {dimension_semantics = [#tpu.dimension_semantics<parallel>], iteration_bounds = array<i64: 1>, scalar_prefetch = 0 : i64, scratch_operands = 0 : i64, tpu.core_type = #tpu.core_type<tc>, window_params = [{transform_indices = @transform_0, window_bounds = array<i64: 8, 16>}, {pipeline_mode = #tpu.pipeline_mode<synchronous>, transform_indices = @transform_1, window_bounds = array<i64: 16, 128>}, {pipeline_mode = #tpu.pipeline_mode<synchronous>, transform_indices = @transform_2, window_bounds = array<i64: 1, 128>}, {pipeline_mode = #tpu.pipeline_mode<synchronous>, transform_indices = @transform_3, window_bounds = array<i64: 128, 128>}, {pipeline_mode = #tpu.pipeline_mode<synchronous>, transform_indices = @transform_4, window_bounds = array<i64: 1, 128>}, {pipeline_mode = #tpu.pipeline_mode<synchronous>, transform_indices = @transform_5, window_bounds = array<i64: 128, 128>}, {pipeline_mode = #tpu.pipeline_mode<synchronous>, transform_indices = @transform_6, window_bounds = array<i64: 1, 128>}, {transform_indices = @transform_7, window_bounds = array<i64: 8, 128>}]} {
    %c0 = arith.constant 0 : index
    %c0_0 = arith.constant 0 : index
    %0 = vector.load %arg1[%c0, %c0_0] : memref<8x16xf32, #tpu.memory_space<vmem>>, vector<8x16xf32>
    %1 = arith.truncf %0 : vector<8x16xf32> to vector<8x16xbf16>
    %c0_1 = arith.constant 0 : index
    %c0_2 = arith.constant 0 : index
    %2 = vector.load %arg2[%c0_1, %c0_2] : memref<16x128xbf16, #tpu.memory_space<vmem>>, vector<16x128xbf16>
    %cst = arith.constant dense<0.000000e+00> : vector<8x128xf32>
    %3 = tpu.matmul %1, %2, %cst {dimension_numbers = #tpu.dot_dimension_numbers<[1], [0], [0], [1], [0, 0, 1, 1], [], []>} : vector<8x16xbf16>, vector<16x128xbf16>, vector<8x128xf32> -> vector<8x128xf32>
    %c0_3 = arith.constant 0 : index
    %c0_4 = arith.constant 0 : index
    %4 = vector.load %arg3[%c0_3, %c0_4] : memref<1x128xf32, #tpu.memory_space<vmem>>, vector<1x128xf32>
    %5 = vector.broadcast %4 : vector<1x128xf32> to vector<8x128xf32>
    %6 = arith.addf %3, %5 : vector<8x128xf32>
    %cst_5 = arith.constant 0.000000e+00 : f32
    %7 = vector.broadcast %cst_5 : f32 to vector<8x128xf32>
    %8 = arith.maximumf %6, %7 : vector<8x128xf32>
    %9 = arith.truncf %8 : vector<8x128xf32> to vector<8x128xbf16>
    %c0_6 = arith.constant 0 : index
    %c0_7 = arith.constant 0 : index
    %10 = vector.load %arg4[%c0_6, %c0_7] : memref<128x128xbf16, #tpu.memory_space<vmem>>, vector<128x128xbf16>
    %cst_8 = arith.constant dense<0.000000e+00> : vector<8x128xf32>
    %11 = tpu.matmul %9, %10, %cst_8 {dimension_numbers = #tpu.dot_dimension_numbers<[1], [0], [0], [1], [0, 0, 1, 1], [], []>} : vector<8x128xbf16>, vector<128x128xbf16>, vector<8x128xf32> -> vector<8x128xf32>
    %c0_9 = arith.constant 0 : index
    %c0_10 = arith.constant 0 : index
    %12 = vector.load %arg5[%c0_9, %c0_10] : memref<1x128xf32, #tpu.memory_space<vmem>>, vector<1x128xf32>
    %13 = vector.broadcast %12 : vector<1x128xf32> to vector<8x128xf32>
    %14 = arith.addf %11, %13 : vector<8x128xf32>
    %cst_11 = arith.constant 0.000000e+00 : f32
    %15 = vector.broadcast %cst_11 : f32 to vector<8x128xf32>
    %16 = arith.maximumf %14, %15 : vector<8x128xf32>
    %17 = arith.truncf %16 : vector<8x128xf32> to vector<8x128xbf16>
    %c0_12 = arith.constant 0 : index
    %c0_13 = arith.constant 0 : index
    %18 = vector.load %arg6[%c0_12, %c0_13] : memref<128x128xbf16, #tpu.memory_space<vmem>>, vector<128x128xbf16>
    %cst_14 = arith.constant dense<0.000000e+00> : vector<8x128xf32>
    %19 = tpu.matmul %17, %18, %cst_14 {dimension_numbers = #tpu.dot_dimension_numbers<[1], [0], [0], [1], [0, 0, 1, 1], [], []>} : vector<8x128xbf16>, vector<128x128xbf16>, vector<8x128xf32> -> vector<8x128xf32>
    %c0_15 = arith.constant 0 : index
    %c0_16 = arith.constant 0 : index
    %20 = vector.load %arg7[%c0_15, %c0_16] : memref<1x128xf32, #tpu.memory_space<vmem>>, vector<1x128xf32>
    %21 = vector.broadcast %20 : vector<1x128xf32> to vector<8x128xf32>
    %22 = arith.addf %19, %21 : vector<8x128xf32>
    %23 = tpu.iota {dimensions = array<i32: 1>} : vector<8x128xi32>
    %c8_i32 = arith.constant 8 : i32
    %24 = vector.broadcast %c8_i32 : i32 to vector<8x128xi32>
    %25 = arith.cmpi sge, %23, %24 : vector<8x128xi32>
    %c16_i32 = arith.constant 16 : i32
    %26 = vector.broadcast %c16_i32 : i32 to vector<8x128xi32>
    %27 = arith.cmpi slt, %23, %26 : vector<8x128xi32>
    %28 = arith.andi %25, %27 : vector<8x128xi1>
    %29 = arith.negf %22 : vector<8x128xf32>
    %30 = math.exp %29 : vector<8x128xf32>
    %cst_17 = arith.constant 1.000000e+00 : f32
    %31 = vector.broadcast %cst_17 : f32 to vector<8x128xf32>
    %32 = arith.addf %31, %30 : vector<8x128xf32>
    %33 = arith.divf %31, %32 : vector<8x128xf32>
    %34 = arith.select %28, %33, %22 : vector<8x128xi1>, vector<8x128xf32>
    %c0_18 = arith.constant 0 : index
    %c0_19 = arith.constant 0 : index
    %35 = vector.load %arg8[%c0_18, %c0_19] : memref<8x128xf32, #tpu.memory_space<vmem>>, vector<8x128xf32>
    tpu.vector_store %arg8[%c0_18, %c0_19], %34 {strides = array<i32>} : memref<8x128xf32, #tpu.memory_space<vmem>>, vector<8x128xf32>,
    return
  }
  func.func @transform_0(%arg0: i32) -> (i32, i32) {
    %c0_i32 = arith.constant 0 : i32
    %c0_i32_0 = arith.constant 0 : i32
    return %arg0, %c0_i32 : i32, i32
  }
  func.func @transform_1(%arg0: i32) -> (i32, i32) {
    %c0_i32 = arith.constant 0 : i32
    %c0_i32_0 = arith.constant 0 : i32
    %c0_i32_1 = arith.constant 0 : i32
    return %c0_i32, %c0_i32_0 : i32, i32
  }
  func.func @transform_2(%arg0: i32) -> (i32, i32) {
    %c0_i32 = arith.constant 0 : i32
    %c0_i32_0 = arith.constant 0 : i32
    %c0_i32_1 = arith.constant 0 : i32
    return %c0_i32, %c0_i32_0 : i32, i32
  }
  func.func @transform_3(%arg0: i32) -> (i32, i32) {
    %c0_i32 = arith.constant 0 : i32
    %c0_i32_0 = arith.constant 0 : i32
    %c0_i32_1 = arith.constant 0 : i32
    return %c0_i32, %c0_i32_0 : i32, i32
  }
  func.func @transform_4(%arg0: i32) -> (i32, i32) {
    %c0_i32 = arith.constant 0 : i32
    %c0_i32_0 = arith.constant 0 : i32
    %c0_i32_1 = arith.constant 0 : i32
    return %c0_i32, %c0_i32_0 : i32, i32
  }
  func.func @transform_5(%arg0: i32) -> (i32, i32) {
    %c0_i32 = arith.constant 0 : i32
    %c0_i32_0 = arith.constant 0 : i32
    %c0_i32_1 = arith.constant 0 : i32
    return %c0_i32, %c0_i32_0 : i32, i32
  }
  func.func @transform_6(%arg0: i32) -> (i32, i32) {
    %c0_i32 = arith.constant 0 : i32
    %c0_i32_0 = arith.constant 0 : i32
    %c0_i32_1 = arith.constant 0 : i32
    return %c0_i32, %c0_i32_0 : i32, i32
  }
  func.func @transform_7(%arg0: i32) -> (i32, i32) {
    %c0_i32 = arith.constant 0 : i32
    %c0_i32_0 = arith.constant 0 : i32
    return %arg0, %c0_i32 : i32, i32
  }
}

</mosaic_0001>

<bundles_post_ra>
// kernel: tpu_custom_call.1
= control target key start
LH: loop header
LB: loop body
LE: loop exit
PB: predicated region body
PF: predicated region fallthrough
CT: control target
= control target key end

     0   :  { %12 = vsyncpa [#allocation3], 0  ;;  %s726_s0 = inlined_call_operand.hbm [shape: f32[8,16], index: 0, kind: input, shape index: {}]   ;;  %s727_s1 = inlined_call_operand.hbm [shape: bf16[16,128], index: 1, kind: input, shape index: {}]   ;;  %s728_s2 = inlined_call_operand.vmem [shape: f32[1,128], index: 2, kind: input, shape index: {}]   ;;  %s729_s3 = inlined_call_operand.hbm [shape: bf16[128,128], index: 3, kind: input, shape index: {}]   ;;  %s730_s4 = inlined_call_operand.vmem [shape: f32[1,128], index: 4, kind: input, shape index: {}]   ;;  %s731_s5 = inlined_call_operand.hbm [shape: bf16[128,128], index: 5, kind: input, shape index: {}]   ;;  %s732_s6 = inlined_call_operand.vmem [shape: f32[1,128], index: 6, kind: input, shape index: {}]   ;;  %s733_s7 = inlined_call_operand.hbm [shape: f32[8,128], index: 7, kind: output, shape index: {}]  }
   0x1   :  { %13 = vsyncpa [#allocation6], 0 }
   0x2   :  { %14 = vsyncpa [#allocation9], 0 }
   0x3   :  { %15 = vsyncpa [#allocation4], 0  ;;  %s624_s24 = smov [#allocation5]  }
   0x4   :  { %s31_s25 = sshll.u32 %s624_s24, 4  ;;  %s32_s25 = int_to_ptr.vmem [resolvable:$true] %s31_s25 }
   0x5   :  { %s524_s26 = scalar_lea.vmem %s32_s25, 128  ;;  %p529_p1 = scmp.lt.s32.totalorder %s32_s25, %s32_s25 }
   0x6   :  { %p525_p0 = scmp.ne.s32.totalorder %s32_s25, %s524_s26  ;;  %p530_p2 = scmp.lt.s32.totalorder %s524_s26, %s524_s26 }
   0x8   :  { %p531_p3 = por %p530_p2, %p529_p1 }
   0xa   :  { %p532_p4 = pnand %p531_p3, %p525_p0 }
   0xc   :  { %535 = shalt.err (!%p532_p4)
}
   0xd   :  { %s625_s27 = smov 64   ;;  %s626_s28 = smov 4  }
   0xe   :  { %37 = dma.hbm_to_vmem [thread:$0]  %s727_s1, 128, %s32_s25, [#allocation6], %s625_s27, %s625_s27, %s626_s28  }
   0xf   :  { %s627_s8 = smov [#allocation2]   ;;  %s628_s10 = smov [#allocation7]  }
  0x10   :  { %s22_s9 = sshll.u32 %s627_s8, 4  ;;  %s45_s11 = sshll.u32 %s628_s10, 4  ;;  %s23_s9 = int_to_ptr.vmem [resolvable:$true] %s22_s9  ;;  %s46_s11 = int_to_ptr.vmem [resolvable:$true] %s45_s11 }
  0x11   :  { %s544_s12 = scalar_lea.vmem %s23_s9, 128  ;;  %p549_p6 = scmp.lt.s32.totalorder %s23_s9, %s23_s9 }
  0x12   :  { %p545_p5 = scmp.ne.s32.totalorder %s23_s9, %s544_s12  ;;  %p550_p7 = scmp.lt.s32.totalorder %s544_s12, %s544_s12 }
  0x14   :  { %p551_p8 = por %p550_p7, %p549_p6 }
  0x16   :  { %p552_p9 = pnand %p551_p8, %p545_p5 }
  0x18   :  { %555 = shalt.err (!%p552_p9)
}
  0x19   :  { %25 = dma.hbm_to_vmem [thread:$0]  %s726_s0, 128, %s23_s9, [#allocation3]  }
  0x1a   :  { %s564_s15 = scalar_lea.vmem %s46_s11, 1024  ;;  %p569_p11 = scmp.lt.s32.totalorder %s46_s11, %s46_s11 }
  0x1b   :  { %p565_p10 = scmp.ne.s32.totalorder %s46_s11, %s564_s15  ;;  %p570_p12 = scmp.lt.s32.totalorder %s564_s15, %s564_s15 }
  0x1d   :  { %p571_p13 = por %p570_p12, %p569_p11 }
  0x1f   :  { %p572_p0 = pnand %p571_p13, %p565_p10 }
  0x21   :  { %575 = shalt.err (!%p572_p0)
}
  0x22   :  { %51 = dma.hbm_to_vmem [thread:$0]  %s729_s3, 1024, %s46_s11, [#allocation6], %s625_s27, %s625_s27, %s626_s28  }
  0x23   :  { %s629_s17 = smov [#allocation8]  }
  0x24   :  { %s59_s18 = sshll.u32 %s629_s17, 4  ;;  %s60_s18 = int_to_ptr.vmem [resolvable:$true] %s59_s18 }
  0x25   :  { %s584_s19 = scalar_lea.vmem %s60_s18, 1024  ;;  %p589_p2 = scmp.lt.s32.totalorder %s60_s18, %s60_s18 }
  0x26   :  { %p585_p1 = scmp.ne.s32.totalorder %s60_s18, %s584_s19  ;;  %p590_p3 = scmp.lt.s32.totalorder %s584_s19, %s584_s19 }
  0x28   :  { %p591_p4 = por %p590_p3, %p589_p2 }
  0x2a   :  { %p592_p5 = pnand %p591_p4, %p585_p1 }
  0x2c   :  { %595 = shalt.err (!%p592_p5)
}
  0x2d   :  { %65 = dma.hbm_to_vmem [thread:$0]  %s731_s5, 1024, %s60_s18, [#allocation9], %s625_s27, %s625_s27, %s626_s28  }
  0x2e   :  { %616 = dma.done.wait [#allocation3], 128  }
  0x2f   :  { %617 = vsyncadd [#allocation3], 4294967168 }
  0x30   :  { %618 = dma.done.wait [#allocation6], 1152  }
  0x31   :  { %619 = vsyncadd [#allocation6], 4294966144 }
  0x32   :  { %620 = dma.done.wait [#allocation9], 1024  }
  0x33   :  { %621 = vsyncadd [#allocation9], 4294966272  ;;  %v630_v0 = vmov 0.0   ;;  %vm631_vm0 = vmmov 0   ;;  %v495_v1 = vld [vmem:[#allocation5] sm:$0xff]   ;;  %v81_v2 = vld [vmem:[#allocation2] sm:$0xff]  ;;  %v368_v45 = vlaneseq }
  0x34   :  { %440 = vmatprep.subr.bf16.mxu0 %v630_v0  ;;  %442 = vmatprep.mubr.msk.bf16.mxu0 %vm631_vm0, %v630_v0  ;;  %v82_v3 = vpack.c.bf16 %v81_v2, %v81_v2  ;;  %vm98_vm1 = vcmask 130048   ;;  %v496_v4 = vld [vmem:[#allocation7 + $0x38] sm:$0xff]   ;;  %v497_v5 = vld [vmem:[#allocation7 + $0x30] sm:$0xff]   ;;  %v498_v6 = vld [vmem:[#allocation7 + $0x28] sm:$0xff]  }
  0x35   :  { %446 = vmatprep.subr.bf16.mxu1 %v630_v0  ;;  %462 = vmatprep.mubr.msk.bf16.mxu1 %vm631_vm0, %v630_v0  ;;  %v499_v7 = vld [vmem:[#allocation7 + $0x20] sm:$0xff]   ;;  %v500_v8 = vld [vmem:[#allocation7 + $0x18] sm:$0xff]   ;;  %v501_v9 = vld [vmem:[#allocation7 + $0x10] sm:$0xff]   ;;  %v369_v46 = vand.u32 127, %v368_v45 }
  0x36   :  { %441 = vmatpush3.bf16.msra.mxu0 %v495_v1  ;;  %447 = vmatpush3.bf16.msra.mxu1 %v496_v4  ;;  %v502_v10 = vld [vmem:[#allocation7 + $0x8] sm:$0xff]   ;;  %v503_v11 = vld [vmem:[#allocation7] sm:$0xff]   ;;  %v504_v12 = vld [vmem:[#allocation8 + $0x38] sm:$0xff]  }
  0x37   :  { %466 = vmatprep.subr.bf16.mxu0 %v630_v0  ;;  %448 = vmatprep.subr.bf16.mxu1 %v630_v0  ;;  %v505_v13 = vld [vmem:[#allocation8 + $0x30] sm:$0xff]   ;;  %v506_v14 = vld [vmem:[#allocation8 + $0x28] sm:$0xff]   ;;  %v507_v15 = vld [vmem:[#allocation8 + $0x20] sm:$0xff]   ;;  %vm370_vm2 = vcmp.ge.s32.totalorder %v369_v46, 8  ;;  %vm371_vm3 = vcmp.lt.s32.totalorder %v369_v46, 16 }
  0x38   :  { %v508_v16 = vld [vmem:[#allocation8 + $0x18] sm:$0xff]   ;;  %v509_v17 = vld [vmem:[#allocation8 + $0x10] sm:$0xff]   ;;  %v510_v26 = vld [vmem:[#allocation8 + $0x8] sm:$0xff]  }
  0x39   :  { %443 = vmatmul.mubr.msk.bf16.vlgmr.msra.gmra.mxu0 %vm98_vm1, %v82_v3  ;;  %v398_v18 = vld [vmem:[%s728_s2] ss:$0 sm:$0xff]  ;;  %v511_v27 = vld [vmem:[#allocation8] sm:$0xff]   ;;  %vm372_vm4 = vmand %vm370_vm2, %vm371_vm3 }
  0x3a   :  { %482 = vmatprep.mubr.msk.bf16.mxu0 %vm631_vm0, %v630_v0  ;;  %449 = vmatpush3.bf16.msra.mxu1 %v497_v5  ;;  %v401_v28 = vld [vmem:[%s730_s4] ss:$0 sm:$0xff]  ;;  %s632_s4 = smov [#allocation10]  }
  0x3b   :  { %450 = vmatprep.subr.bf16.mxu1 %v630_v0  ;;  %467 = vmatpush3.bf16.msra.mxu0 %v504_v12  ;;  %v410_v36 = vld [vmem:[%s732_s6] ss:$0 sm:$0xff]  ;;  %s387_s24 = sshll.u32 %s632_s4, 4  ;;  %s388_s24 = int_to_ptr.vmem [resolvable:$true] %s387_s24 }
  0x3c   :  { %468 = vmatprep.subr.bf16.mxu0 %v630_v0  ;;  %s596_s6 = scalar_lea.vmem %s388_s24, 128  ;;  %p601_p7 = scmp.lt.s32.totalorder %s388_s24, %s388_s24 }
  0x3d   :  { %p597_p6 = scmp.ne.s32.totalorder %s388_s24, %s596_s6  ;;  %p602_p8 = scmp.lt.s32.totalorder %s596_s6, %s596_s6 }
  0x3e   :  { %451 = vmatpush3.bf16.msra.mxu1 %v498_v6 }
  0x3f   :  { %452 = vmatprep.subr.bf16.mxu1 %v630_v0  ;;  %469 = vmatpush3.bf16.msra.mxu0 %v505_v13  ;;  %p603_p9 = por %p602_p8, %p601_p7 }
  0x40   :  { %470 = vmatprep.subr.bf16.mxu0 %v630_v0 }
  0x41   :  { %p604_p10 = pnand %p603_p9, %p597_p6 }
  0x42   :  { %453 = vmatpush3.bf16.msra.mxu1 %v499_v7 }
  0x43   :  { %454 = vmatprep.subr.bf16.mxu1 %v630_v0  ;;  %471 = vmatpush3.bf16.msra.mxu0 %v506_v14 }
  0x44   :  { %472 = vmatprep.subr.bf16.mxu0 %v630_v0 }
  0x46   :  { %455 = vmatpush3.bf16.msra.mxu1 %v500_v8 }
  0x47   :  { %456 = vmatprep.subr.bf16.mxu1 %v630_v0  ;;  %473 = vmatpush3.bf16.msra.mxu0 %v507_v15 }
  0x48   :  { %474 = vmatprep.subr.bf16.mxu0 %v630_v0 }
  0x4a   :  { %457 = vmatpush3.bf16.msra.mxu1 %v501_v9 }
  0x4b   :  { %458 = vmatprep.subr.bf16.mxu1 %v630_v0  ;;  %475 = vmatpush3.bf16.msra.mxu0 %v508_v16 }
  0x4c   :  { %476 = vmatprep.subr.bf16.mxu0 %v630_v0 }
  0x4e   :  { %459 = vmatpush3.bf16.msra.mxu1 %v502_v10 }
  0x4f   :  { %460 = vmatprep.subr.bf16.mxu1 %v630_v0  ;;  %477 = vmatpush3.bf16.msra.mxu0 %v509_v17 }
  0x50   :  { %478 = vmatprep.subr.bf16.mxu0 %v630_v0 }
  0x52   :  { %461 = vmatpush3.bf16.msra.mxu1 %v503_v11 }
  0x53   :  { %479 = vmatpush3.bf16.msra.mxu0 %v510_v26 }
  0x54   :  { %480 = vmatprep.subr.bf16.mxu0 %v630_v0 }
  0x57   :  { %481 = vmatpush3.bf16.msra.mxu0 %v511_v27 }
  0xf9   :  { %v136_v19 = vpop.f32.mrf.mxu0 }
  0xfa   :  { %v137_v20 = vadd.f32 %v398_v18, %v136_v19 }
  0xfb   :  { %v444_v21 = vpop.f32.mrf.mxu0 }
  0xfc   :  { %v142_v22 = vmax.f32 %v137_v20, 0.0 }
  0xfd   :  { %v139_v23 = vpop.f32.mrf.mxu0 }
  0xfe   :  { %v143_v24 = vpack.c.bf16 %v142_v22, %v142_v22 }
  0xff   :  { %v445_v25 = vpop.f32.mrf.mxu0 }
 0x100   :  { %463 = vmatmul.mubr.bf16.vlgmr.msra.gmra.mxu1 %v143_v24 }
 0x1c0   :  { %v249_v29 = vpop.f32.mrf.mxu1 }
 0x1c1   :  { %v250_v30 = vadd.f32 %v401_v28, %v249_v29 }
 0x1c2   :  { %v464_v31 = vpop.f32.mrf.mxu1 }
 0x1c3   :  { %v255_v32 = vmax.f32 %v250_v30, 0.0 }
 0x1c4   :  { %v252_v33 = vpop.f32.mrf.mxu1 }
 0x1c5   :  { %v256_v34 = vpack.c.bf16 %v255_v32, %v255_v32 }
 0x1c6   :  { %v465_v35 = vpop.f32.mrf.mxu1 }
 0x1c7   :  { %483 = vmatmul.mubr.bf16.vlgmr.msra.gmra.mxu0 %v256_v34 }
 0x287   :  { %v362_v37 = vpop.f32.mrf.mxu0 }
 0x288   :  { %v363_v38 = vadd.f32 %v410_v36, %v362_v37 }
 0x289   :  { %v484_v39 = vpop.f32.mrf.mxu0 }
 0x28a   :  { %v419_v40 = vmul.f32 -1.442695, %v363_v38 }
 0x28b   :  { %v365_v41 = vpop.f32.mrf.mxu0 }
 0x28c   :  { %512 = vpow2.f32 %v419_v40 }
 0x28d   :  { %v485_v42 = vpop.f32.mrf.mxu0 }
 0x299   :  { %v513_v43 = vpop.eup %512 }
 0x29a   :  { %v376_v44 = vadd.f32 1.0, %v513_v43 }
 0x29c   :  { %514 = vrcp.f32 %v376_v44 }
 0x2a9   :  { %v515_v47 = vpop.eup %514 }
 0x2aa   :  { %v379_v48 = vsel %vm372_vm4, %v515_v47, %v363_v38 }
 0x2ab   :  { %380 = vst [vmem:[#allocation10] sm:$0xff] %v379_v48 }
 0x2ac   :  { %607 = shalt.err (!%p604_p10)
}
 0x2ad   :  { %390 = dma.vmem_to_hbm [thread:$0]  %s388_s24, 128, %s733_s7, [#allocation4]  }
 0x2ae   :  { %622 = dma.done.wait [#allocation4], 128  }
 0x2af   :  { %623 = vsyncadd [#allocation4], 4294967168 }
 0x2b0   :  { %394 = vsyncpa [#allocation3], 1 }
 0x2b1   :  { %395 = vsyncpa [#allocation6], 1 }
 0x2b2   :  { %396 = vsyncpa [#allocation9], 1 }
 0x2b3   :  { %397 = vsyncpa [#allocation4], 1 }

</bundles_post_ra>
